<compile_context>
chip_gen: v7x
topology: tpu7x:2x2x1
jax: 0.10.0
libtpu: 0.0.40
codegen_flags: <defaults>
</compile_context>

<pallas_src>
import functools

import jax
import jax.numpy as jnp
from jax.experimental import pallas as pl
from jax.experimental.pallas import tpu as pltpu

_LANES = 128
_SUBLANES = 8
_VMEM_TILE_BUDGET = 20 * 1024 * 1024   # working-set budget used for tile sizing
_VMEM_LIMIT = 32 * 1024 * 1024         # <= default scoped VMEM on v6e/v7x, raises v5e
_MAX_TILE_ROWS = 2048                  # 256K px / step: well past the roofline knee


def _row_granule(dtype) -> int:
    # Sublane packing: the second-to-last block dim must be a multiple of this.
    return {4: 8, 2: 16, 1: 32}.get(jnp.dtype(dtype).itemsize, 8)


def _pick_tile_rows(R, C, logit_itemsize, target_itemsize, granule):
    # Per-step VMEM: double-buffered logits + target blocks plus roughly two
    # block-sized f32 temporaries (softmax exp / indicator).
    per_row = _LANES * (2 * (C * logit_itemsize + target_itemsize) + 2 * C * 4)
    cap = max(_VMEM_TILE_BUDGET // per_row, granule)
    cap = min(cap, _MAX_TILE_ROWS)
    tile = min(cap, R)
    tile = (tile // granule) * granule
    return max(tile, granule)


def _volume_error_kernel(n_classes, total_valid, tile_rows, needs_mask,
                         logits_ref, target_ref, inp_acc_ref, tgt_acc_ref):
    s_idx = pl.program_id(1)

    @pl.when(s_idx == 0)
    def _init():
        inp_acc_ref[...] = jnp.zeros_like(inp_acc_ref)
        tgt_acc_ref[...] = jnp.zeros_like(tgt_acc_ref)

    if n_classes == 1:
        # (sigmoid(x) > 0.5)  ==  (x > 0): no transcendental needed.
        x = logits_ref[0, 0]                                    # (T, 128)
        inp_ind = (x > 0).astype(jnp.float32)
        tgt_ind = target_ref[0].astype(jnp.float32)             # raw targets
    else:
        # softmax(x)_c > 0.5 can only hold for the argmax class and holds
        # iff sum_c exp(x_c - max_c x_c) < 2  (no divide, no per-class test).
        x = logits_ref[0].astype(jnp.float32)                   # (C, T, 128)
        m = jnp.max(x, axis=0)                                  # (T, 128)
        denom = jnp.sum(jnp.exp(x - m[None, :, :]), axis=0)     # (T, 128)
        inp_ind = (denom < 2.0).astype(jnp.float32)
        # one_hot(t).sum() per pixel == 1 iff the label is a valid class id.
        t = target_ref[0]                                       # (T, 128) int
        tgt_ind = ((t >= 0) & (t < n_classes)).astype(jnp.float32)

    if needs_mask:
        # Mask lane-alignment padding and the out-of-bounds rows of the final
        # (partial) spatial tile.  Select (not multiply) so OOB garbage,
        # including NaN/Inf target floats, cannot corrupt the sums.
        row_ids = jax.lax.broadcasted_iota(jnp.int32, (tile_rows, _LANES), 0)
        lane_ids = jax.lax.broadcasted_iota(jnp.int32, (tile_rows, _LANES), 1)
        flat_idx = (s_idx * tile_rows + row_ids) * _LANES + lane_ids
        valid = flat_idx < total_valid
        inp_ind = jnp.where(valid, inp_ind, 0.0)
        tgt_ind = jnp.where(valid, tgt_ind, 0.0)

    part_inp = inp_ind.reshape(tile_rows // _SUBLANES, _SUBLANES, _LANES).sum(axis=0)
    part_tgt = tgt_ind.reshape(tile_rows // _SUBLANES, _SUBLANES, _LANES).sum(axis=0)
    inp_acc_ref[0] += part_inp
    tgt_acc_ref[0] += part_tgt


def volume_error(logits, target, n_classes, class_id=1):
    """Pallas implementation of VolumeError.forward.

    logits: (N, C, H, W).  target: (N, 1, H, W) integer class ids when
    n_classes > 1, or float mask values when n_classes == 1.
    `class_id` is kept for API parity; it is unused in the reference forward.
    """
    del class_id
    N, C, H, W = logits.shape
    assert n_classes == 1 or C == n_classes

    L = H * W
    granule = max(_row_granule(logits.dtype), _row_granule(target.dtype))
    # Lane-align and guarantee at least one full sublane granule of rows.
    Lp = max(-(-L // _LANES) * _LANES, granule * _LANES)
    R = Lp // _LANES

    logits_flat = logits.reshape(N, C, L)
    target_flat = target.reshape(N, L)
    if Lp != L:
        # Minimal alignment pad (< granule*128 elements).  Pad values are
        # don't-care: the kernel masks on the flat element index.
        logits_flat = jnp.pad(logits_flat, ((0, 0), (0, 0), (0, Lp - L)))
        target_flat = jnp.pad(target_flat, ((0, 0), (0, Lp - L)))
    logits_r = logits_flat.reshape(N, C, R, _LANES)
    target_r = target_flat.reshape(N, R, _LANES)

    tile_rows = _pick_tile_rows(R, C, jnp.dtype(logits.dtype).itemsize,
                                jnp.dtype(target.dtype).itemsize, granule)
    num_tiles = pl.cdiv(R, tile_rows)
    needs_mask = (num_tiles * tile_rows * _LANES) != L

    kernel = functools.partial(_volume_error_kernel, n_classes, L, tile_rows,
                               needs_mask)
    inp_part, tgt_part = pl.pallas_call(
        kernel,
        out_shape=(
            jax.ShapeDtypeStruct((N, _SUBLANES, _LANES), jnp.float32),
            jax.ShapeDtypeStruct((N, _SUBLANES, _LANES), jnp.float32),
        ),
        grid=(N, num_tiles),
        in_specs=[
            pl.BlockSpec((1, C, tile_rows, _LANES), lambda n, s: (n, 0, s, 0)),
            pl.BlockSpec((1, tile_rows, _LANES), lambda n, s: (n, s, 0)),
        ],
        out_specs=[
            pl.BlockSpec((1, _SUBLANES, _LANES), lambda n, s: (n, 0, 0)),
            pl.BlockSpec((1, _SUBLANES, _LANES), lambda n, s: (n, 0, 0)),
        ],
        compiler_params=pltpu.CompilerParams(
            dimension_semantics=("parallel", "arbitrary"),
            vmem_limit_bytes=_VMEM_LIMIT),
    )(logits_r, target_r)

    inp_sum = jnp.sum(inp_part)
    tgt_sum = jnp.sum(tgt_part)
    weight = 1.0 / (tgt_sum + 1.0)
    return jnp.abs(inp_sum - tgt_sum) * weight / 4.0


def _reference(logits, target, n_classes):
    # pure-JAX reference of the PyTorch forward, for a sanity check
    if n_classes == 1:
        p = jax.nn.sigmoid(logits)
        tgt = target.astype(jnp.float32)
    else:
        p = jax.nn.softmax(logits, axis=1)
        tgt = jax.nn.one_hot(target[:, 0], n_classes, dtype=jnp.float32)
    t_sum = tgt.sum()
    i_sum = (p > 0.5).astype(jnp.float32).sum()
    weight = 1.0 / (t_sum + 1.0)
    return jnp.abs(i_sum - t_sum) * weight / 4.0


if __name__ == "__main__":
    key = jax.random.PRNGKey(0)
    k1, k2, k3, k4, k5, k6 = jax.random.split(key, 6)

    # Multi-class (softmax) path, aligned-ish small shape.
    n_classes = 4
    N, H, W = 2, 16, 16
    logits = jax.random.normal(k1, (N, n_classes, H, W), dtype=jnp.float32)
    target = jax.random.randint(k2, (N, 1, H, W), 0, n_classes, dtype=jnp.int32)
    result = jax.block_until_ready(volume_error(logits, target, n_classes))
    ref = _reference(logits, target, n_classes)
    assert jnp.abs(result - ref) < 1e-5, (result, ref)

    # Binary (sigmoid) path.
    logits1 = jax.random.normal(k3, (N, 1, H, W), dtype=jnp.float32)
    target1 = (jax.random.uniform(k4, (N, 1, H, W)) > 0.5).astype(jnp.float32)
    result1 = jax.block_until_ready(volume_error(logits1, target1, 1))
    ref1 = _reference(logits1, target1, 1)
    assert jnp.abs(result1 - ref1) < 1e-5, (result1, ref1)

    # Shapes that exercise the partial (masked) tail tile, N=1, C=3.
    logits2 = jax.random.normal(k5, (1, 3, 48, 48), dtype=jnp.float32)
    target2 = jax.random.randint(k6, (1, 1, 48, 48), 0, 3, dtype=jnp.int32)
    result2 = jax.block_until_ready(volume_error(logits2, target2, 3))
    ref2 = _reference(logits2, target2, 3)
    assert jnp.abs(result2 - ref2) < 1e-5, (result2, ref2)

    # Binary path with a partial tail tile (garbage-masked target reads).
    logits3 = jax.random.normal(k5, (1, 1, 48, 48), dtype=jnp.float32)
    target3 = (jax.random.uniform(k6, (1, 1, 48, 48)) > 0.5).astype(jnp.float32)
    result3 = jax.block_until_ready(volume_error(logits3, target3, 1))
    ref3 = _reference(logits3, target3, 1)
    assert jnp.abs(result3 - ref3) < 1e-5, (result3, ref3)

    print("KERNEL_OK")
</pallas_src>

<mosaic_0001>
module attributes {stable_mosaic.version = 11 : i64} {
  func.func @_volume_error_kernel(%arg0: i32, %arg1: i32, %arg2: memref<1x4x8x128xf32, #tpu.memory_space<vmem>>, %arg3: memref<1x8x128xi32, #tpu.memory_space<vmem>>, %arg4: memref<1x8x128xf32, #tpu.memory_space<vmem>>, %arg5: memref<1x8x128xf32, #tpu.memory_space<vmem>>) attributes {dimension_semantics = [#tpu.dimension_semantics<parallel>, #tpu.dimension_semantics<arbitrary>], iteration_bounds = array<i64: 2, 1>, scalar_prefetch = 0 : i64, scratch_operands = 0 : i64, tpu.core_type = #tpu.core_type<tc>, window_params = [{transform_indices = @transform_0, window_bounds = array<i64: 1, 4, 8, 128>}, {transform_indices = @transform_1, window_bounds = array<i64: 1, 8, 128>}, {transform_indices = @transform_2, window_bounds = array<i64: 1, 8, 128>}, {transform_indices = @transform_3, window_bounds = array<i64: 1, 8, 128>}]} {
    %c0_i32 = arith.constant 0 : i32
    %0 = arith.cmpi eq, %arg1, %c0_i32 : i32
    %1 = arith.extui %0 : i1 to i32
    %c0_i32_0 = arith.constant 0 : i32
    %2 = arith.cmpi ne, %1, %c0_i32_0 : i32
    scf.if %2 {
      %cst_26 = arith.constant 0.000000e+00 : f32
      %54 = vector.broadcast %cst_26 : f32 to vector<1x8x128xf32>
      %c0_27 = arith.constant 0 : index
      %c0_28 = arith.constant 0 : index
      %c0_29 = arith.constant 0 : index
      %55 = vector.load %arg4[%c0_27, %c0_28, %c0_29] : memref<1x8x128xf32, #tpu.memory_space<vmem>>, vector<1x8x128xf32>
      tpu.vector_store %arg4[%c0_27, %c0_28, %c0_29], %54 {strides = array<i32>} : memref<1x8x128xf32, #tpu.memory_space<vmem>>, vector<1x8x128xf32>,
      %cst_30 = arith.constant 0.000000e+00 : f32
      %56 = vector.broadcast %cst_30 : f32 to vector<1x8x128xf32>
      %c0_31 = arith.constant 0 : index
      %c0_32 = arith.constant 0 : index
      %c0_33 = arith.constant 0 : index
      %57 = vector.load %arg5[%c0_31, %c0_32, %c0_33] : memref<1x8x128xf32, #tpu.memory_space<vmem>>, vector<1x8x128xf32>
      tpu.vector_store %arg5[%c0_31, %c0_32, %c0_33], %56 {strides = array<i32>} : memref<1x8x128xf32, #tpu.memory_space<vmem>>, vector<1x8x128xf32>,
    } else {
    }
    %c0 = arith.constant 0 : index
    %c0_1 = arith.constant 0 : index
    %c0_2 = arith.constant 0 : index
    %c0_3 = arith.constant 0 : index
    %3 = vector.load %arg2[%c0, %c0_1, %c0_2, %c0_3] : memref<1x4x8x128xf32, #tpu.memory_space<vmem>>, vector<1x4x8x128xf32>
    %4 = vector.shape_cast %3 : vector<1x4x8x128xf32> to vector<4x8x128xf32>
    %cst = arith.constant dense<0xFF800000> : vector<8x128xf32>
    %5 = vector.multi_reduction <maximumf>, %4, %cst [0] : vector<4x8x128xf32> to vector<8x128xf32>
    %6 = vector.shape_cast %5 : vector<8x128xf32> to vector<1x8x128xf32>
    %7 = vector.broadcast %6 : vector<1x8x128xf32> to vector<4x8x128xf32>
    %8 = arith.subf %4, %7 : vector<4x8x128xf32>
    %9 = math.exp %8 : vector<4x8x128xf32>
    %cst_4 = arith.constant dense<0.000000e+00> : vector<8x128xf32>
    %10 = vector.multi_reduction <add>, %9, %cst_4 [0] : vector<4x8x128xf32> to vector<8x128xf32>
    %cst_5 = arith.constant 2.000000e+00 : f32
    %11 = vector.broadcast %cst_5 : f32 to vector<8x128xf32>
    %12 = arith.cmpf olt, %10, %11 : vector<8x128xf32>
    %13 = arith.extui %12 : vector<8x128xi1> to vector<8x128xi32>
    %14 = arith.sitofp %13 : vector<8x128xi32> to vector<8x128xf32>
    %c0_6 = arith.constant 0 : index
    %c0_7 = arith.constant 0 : index
    %c0_8 = arith.constant 0 : index
    %15 = vector.load %arg3[%c0_6, %c0_7, %c0_8] : memref<1x8x128xi32, #tpu.memory_space<vmem>>, vector<1x8x128xi32>
    %16 = vector.shape_cast %15 : vector<1x8x128xi32> to vector<8x128xi32>
    %c0_i32_9 = arith.constant 0 : i32
    %17 = vector.broadcast %c0_i32_9 : i32 to vector<8x128xi32>
    %18 = arith.cmpi sge, %16, %17 : vector<8x128xi32>
    %c4_i32 = arith.constant 4 : i32
    %19 = vector.broadcast %c4_i32 : i32 to vector<8x128xi32>
    %20 = arith.cmpi slt, %16, %19 : vector<8x128xi32>
    %21 = arith.andi %18, %20 : vector<8x128xi1>
    %22 = arith.extui %21 : vector<8x128xi1> to vector<8x128xi32>
    %23 = arith.sitofp %22 : vector<8x128xi32> to vector<8x128xf32>
    %24 = tpu.iota {dimensions = array<i32: 0>} : vector<8x128xi32>
    %25 = tpu.iota {dimensions = array<i32: 1>} : vector<8x128xi32>
    %c8_i32 = arith.constant 8 : i32
    %26 = arith.muli %arg1, %c8_i32 : i32
    %27 = vector.broadcast %26 : i32 to vector<8x128xi32>
    %28 = arith.addi %27, %24 : vector<8x128xi32>
    %c128_i32 = arith.constant 128 : i32
    %29 = vector.broadcast %c128_i32 : i32 to vector<8x128xi32>
    %30 = arith.muli %28, %29 : vector<8x128xi32>
    %31 = arith.addi %30, %25 : vector<8x128xi32>
    %c256_i32 = arith.constant 256 : i32
    %32 = vector.broadcast %c256_i32 : i32 to vector<8x128xi32>
    %33 = arith.cmpi slt, %31, %32 : vector<8x128xi32>
    %cst_10 = arith.constant 0.000000e+00 : f32
    %34 = vector.broadcast %cst_10 : f32 to vector<8x128xf32>
    %35 = arith.select %33, %14, %34 : vector<8x128xi1>, vector<8x128xf32>
    %cst_11 = arith.constant 0.000000e+00 : f32
    %36 = vector.broadcast %cst_11 : f32 to vector<8x128xf32>
    %37 = arith.select %33, %23, %36 : vector<8x128xi1>, vector<8x128xf32>
    %38 = vector.shape_cast %35 : vector<8x128xf32> to vector<1x8x128xf32>
    %cst_12 = arith.constant dense<0.000000e+00> : vector<8x128xf32>
    %39 = vector.multi_reduction <add>, %38, %cst_12 [0] : vector<1x8x128xf32> to vector<8x128xf32>
    %40 = vector.shape_cast %37 : vector<8x128xf32> to vector<1x8x128xf32>
    %cst_13 = arith.constant dense<0.000000e+00> : vector<8x128xf32>
    %41 = vector.multi_reduction <add>, %40, %cst_13 [0] : vector<1x8x128xf32> to vector<8x128xf32>
    %c0_14 = arith.constant 0 : index
    %c0_15 = arith.constant 0 : index
    %c0_16 = arith.constant 0 : index
    %42 = vector.load %arg4[%c0_14, %c0_15, %c0_16] : memref<1x8x128xf32, #tpu.memory_space<vmem>>, vector<1x8x128xf32>
    %43 = vector.shape_cast %42 : vector<1x8x128xf32> to vector<8x128xf32>
    %44 = arith.addf %43, %39 : vector<8x128xf32>
    %c0_17 = arith.constant 0 : index
    %c0_18 = arith.constant 0 : index
    %c0_19 = arith.constant 0 : index
    %45 = vector.load %arg4[%c0_17, %c0_18, %c0_19] : memref<1x8x128xf32, #tpu.memory_space<vmem>>, vector<1x8x128xf32>
    %46 = vector.shape_cast %45 : vector<1x8x128xf32> to vector<8x128xf32>
    %47 = vector.shape_cast %44 : vector<8x128xf32> to vector<1x8x128xf32>
    tpu.vector_store %arg4[%c0_17, %c0_18, %c0_19], %47 {strides = array<i32>} : memref<1x8x128xf32, #tpu.memory_space<vmem>>, vector<1x8x128xf32>,
    %c0_20 = arith.constant 0 : index
    %c0_21 = arith.constant 0 : index
    %c0_22 = arith.constant 0 : index
    %48 = vector.load %arg5[%c0_20, %c0_21, %c0_22] : memref<1x8x128xf32, #tpu.memory_space<vmem>>, vector<1x8x128xf32>
    %49 = vector.shape_cast %48 : vector<1x8x128xf32> to vector<8x128xf32>
    %50 = arith.addf %49, %41 : vector<8x128xf32>
    %c0_23 = arith.constant 0 : index
    %c0_24 = arith.constant 0 : index
    %c0_25 = arith.constant 0 : index
    %51 = vector.load %arg5[%c0_23, %c0_24, %c0_25] : memref<1x8x128xf32, #tpu.memory_space<vmem>>, vector<1x8x128xf32>
    %52 = vector.shape_cast %51 : vector<1x8x128xf32> to vector<8x128xf32>
    %53 = vector.shape_cast %50 : vector<8x128xf32> to vector<1x8x128xf32>
    tpu.vector_store %arg5[%c0_23, %c0_24, %c0_25], %53 {strides = array<i32>} : memref<1x8x128xf32, #tpu.memory_space<vmem>>, vector<1x8x128xf32>,
    return
  }
  func.func @transform_0(%arg0: i32, %arg1: i32) -> (i32, i32, i32, i32) {
    %c0_i32 = arith.constant 0 : i32
    %c0_i32_0 = arith.constant 0 : i32
    %c0_i32_1 = arith.constant 0 : i32
    return %arg0, %c0_i32, %arg1, %c0_i32_0 : i32, i32, i32, i32
  }
  func.func @transform_1(%arg0: i32, %arg1: i32) -> (i32, i32, i32) {
    %c0_i32 = arith.constant 0 : i32
    %c0_i32_0 = arith.constant 0 : i32
    return %arg0, %arg1, %c0_i32 : i32, i32, i32
  }
  func.func @transform_2(%arg0: i32, %arg1: i32) -> (i32, i32, i32) {
    %c0_i32 = arith.constant 0 : i32
    %c0_i32_0 = arith.constant 0 : i32
    %c0_i32_1 = arith.constant 0 : i32
    return %arg0, %c0_i32, %c0_i32_0 : i32, i32, i32
  }
  func.func @transform_3(%arg0: i32, %arg1: i32) -> (i32, i32, i32) {
    %c0_i32 = arith.constant 0 : i32
    %c0_i32_0 = arith.constant 0 : i32
    %c0_i32_1 = arith.constant 0 : i32
    return %arg0, %c0_i32, %c0_i32_0 : i32, i32, i32
  }
}

</mosaic_0001>

<bundles_post_ra>
// kernel: tpu_custom_call.1
= control target key start
LH: loop header
LB: loop body
LE: loop exit
PB: predicated region body
PF: predicated region fallthrough
CT: control target
= control target key end

     0   :  { %9 = vsyncpa [#allocation3], 0  ;;  %s1053_s0 = inlined_call_operand.hbm [shape: f32[2,4,8,128], index: 0, kind: input, shape index: {}]   ;;  %s1054_s1 = inlined_call_operand.hbm [shape: s32[2,8,128], index: 1, kind: input, shape index: {}]   ;;  %s1055_s2 = inlined_call_operand.hbm [shape: f32[2,8,128], index: 2, kind: output, shape index: {0}]   ;;  %s1056_s3 = inlined_call_operand.hbm [shape: f32[2,8,128], index: 3, kind: output, shape index: {1}]  }
   0x1   :  { %11 = vsyncpa [#allocation3 + $0x1], 0 }
   0x2   :  { %12 = vsyncpa [#allocation6], 0 }
   0x3   :  { %14 = vsyncpa [#allocation6 + $0x1], 0 }
   0x4   :  { %15 = vsyncpa [#allocation4], 0 }
   0x5   :  { %17 = vsyncpa [#allocation4 + $0x1], 0 }
   0x6   :  { %18 = vsyncpa [#allocation9], 0 }
   0x7   :  { %20 = vsyncpa [#allocation9 + $0x1], 0  ;;  %s793_s12 = smov 0   ;;  %s795_s13 = smov 0  }
   0x8   :  { %s797_s14 = smov 0   ;;  %s799_s15 = smov 0  }
   0x9   :  { %s801_s16 = smov 0   ;;  %s803_s17 = smov 0  }
   0xa LB: > { %s480_s18 = sadd.s32 4294967295, %s764_s17   ;;  %s481_s19 = sadd.s32 4294967294, %s764_s17   ;;  %s764_s17 = sphi %s803_s17, %s26_s17   ;;  %s760_s16 = sphi %s801_s16, %s1075_s16   ;;  %s756_s15 = sphi %s799_s15, %s1074_s15   ;;  %s752_s14 = sphi %s797_s14, %s1073_s14   ;;  %s748_s13 = sphi %s795_s13, %s1072_s13   ;;  %s744_s12 = sphi %s793_s12, %s1071_s12  }
   0xb   : > { %s38_s20 = sadd.s32 1, %s760_s16  ;;  %s47_s21 = sadd.s32 1, %s752_s14 }
   0xc   : > { %p40_p0 = scmp.ge.s32.totalorder %s38_s20, 2  ;;  %p54_p1 = scmp.ne.s32.totalorder %s752_s14, %s748_s13 }
   0xd   : > { %p55_p2 = scmp.eq.s32.totalorder %s764_s17, 0  ;;  %p60_p3 = scmp.ne.s32.totalorder %s748_s13, %s744_s12 }
   0xe   : > { %s1077_s20 = smov (%p40_p0, %s38_s20), 0  ;;  %p61_p5 = scmp.eq.s32.totalorder %s480_s18, 0 }
   0xf   : > { %p834_p4 = por %p55_p2, %p54_p1  ;;  %s42_s23 = ssub.s32 %s760_s16, %s1077_s20 }
  0x10   : > { %p112_p6 = scmp.eq.s32.totalorder %s480_s18, 1  ;;  %p45_p7 = scmp.eq.s32.totalorder %s42_s23, 0 }
  0x11   : > { %p840_p8 = por %p61_p5, %p60_p3  ;;  %p118_p10 = scmp.eq.s32.totalorder %s481_s19, 1 }
  0x12   : > { %p844_p9 = por %p112_p6, %p54_p1  ;;  %p525_p13 = scmp.lt.s32.totalorder %s764_s17, 2 }
  0x13   : > { %s1060_s24 = scalar_select %p840_p8, 1, 0 }
  0x14   : > { %s1061_s25 = scalar_select %p844_p9, 1, 0 }
  0x15   : > { %s849_s26 = scalar_select %p45_p7, %s752_s14, %s47_s21  }
  0x16   : > { %p851_p11 = por %p118_p10, %p60_p3  ;;  %s858_s28 = sand.u32 1, %s752_s14  }
  0x17   : > { %s484_s29 = sshll.u32 %s858_s28, 5  ;;  %s502_s30 = sshll.u32 %s760_s16, 9 }
  0x18   : > { %s1062_s27 = scalar_select %p851_p11, 1, 0 }
  0x19   : > { %s865_s6 = scalar_lea.hbm %s1053_s0, %s502_s30  ;;  %s168_s7 = scalar_lea.vmem [#allocation2], %s484_s29 }
  0x1a   : > { %s176_s8 = sshll.u32 %s168_s7, 4  ;;  %p871_p0 = pnand %p525_p13, %p834_p4  ;;  %s867_s8 = int_to_ptr.vmem [resolvable:$true] %s176_s8 }
  0x1b   : > { %s165_s10 = scalar_lea.sflag [#allocation3], %s858_s28  ;;  %s586_s11 = scalar_lea.hbm %s865_s6, 512 }
  0x1c   : > { %p587_p2 = scmp.ne.s32.totalorder %s865_s6, %s586_s11  ;;  %p588_p3 = pneg %p871_p0 }
  0x1d   : > { %s591_s21 = scalar_lea.hbm %s1053_s0, 1024  ;;  %p592_p4 = scmp.lt.u32.totalorder %s865_s6, %s1053_s0 }
  0x1e   : > { %p589_p5 = pnand %p588_p3, %p587_p2  ;;  %p593_p7 = scmp.lt.u32.totalorder %s591_s21, %s586_s11 }
  0x1f   : > { %p595_p13 = scmp.lt.u32.totalorder %s586_s11, %s865_s6 }
  0x20   : > { %p590_p6 = pneg %p589_p5  ;;  %p594_p10 = por %p593_p7, %p592_p4 }
  0x22   : > { %p596_p12 = por %p595_p13, %p594_p10 }
  0x24   : > { %p597_p1 = pnand %p596_p12, %p590_p6 }
  0x26   : > { %600 = shalt.err (!%p597_p1)
}
  0x27   : > { %s601_s29 = scalar_lea.vmem %s867_s8, 512  ;;  %s766_s30 = smov [#allocation2]  }
  0x28   : > { %p602_p2 = scmp.ne.s32.totalorder %s867_s8, %s601_s29  ;;  %s606_s4 = sshll.u32 %s766_s30, 4  ;;  %s607_s4 = int_to_ptr.vmem [resolvable:$false] %s606_s4 }
  0x29   : > { %s608_s5 = scalar_lea.vmem %s607_s4, 1024  ;;  %p609_p9 = scmp.lt.s32.totalorder %s867_s8, %s607_s4 }
  0x2a   : > { %p604_p5 = pnand %p602_p2, %p588_p3  ;;  %p610_p4 = scmp.lt.s32.totalorder %s608_s5, %s601_s29 }
  0x2c   : > { %p605_p11 = pneg %p604_p5  ;;  %p611_p7 = por %p610_p4, %p609_p9 }
  0x2e   : > { %p612_p10 = pnand %p611_p7, %p605_p11 }
  0x30   : > { %615 = shalt.err (!%p612_p10)
}
  0x31   : > { %s767_s7 = smov 128   ;;  %s768_s11 = smov 8  }
  0x32   : > { %514 = dma.hbm_to_vmem [thread:$0]  (!%p871_p0), %s865_s6, 512, %s867_s8, %s165_s10, %s767_s7, %s767_s7, %s768_s11  }
  0x33   : > { %p203_p12 = scmp.lt.s32.totalorder %s764_s17, 3  ;;  %s487_s18 = sshll.u32 %s858_s28, 3 }
  0x34   : > { %s488_s19 = sshll.u32 %s760_s16, 7  ;;  %p1064_p9 = scmp.ge.s32.totalorder %s764_s17, 1 }
  0x35   : > { %s916_s29 = scalar_lea.hbm %s1054_s1, %s488_s19  ;;  %s190_s30 = scalar_lea.vmem [#allocation5], %s487_s18 }
  0x36   : > { %p909_p11 = pnand %p1064_p9, %p203_p12  ;;  %s198_s4 = sshll.u32 %s190_s30, 4  ;;  %s199_s4 = int_to_ptr.vmem [resolvable:$true] %s198_s4 }
  0x37   : > { %s187_s6 = scalar_lea.sflag [#allocation6], %s858_s28  ;;  %s616_s8 = scalar_lea.hbm %s916_s29, 128 }
  0x38   : > { %s1065_s21 = scalar_select %p909_p11, 1, 0 }
  0x39   : > { %p617_p1 = scmp.ne.s32.totalorder %s916_s29, %s616_s8  ;;  %s621_s7 = scalar_lea.hbm %s1054_s1, 256 }
  0x3a   : > { %p622_p2 = scmp.lt.u32.totalorder %s916_s29, %s1054_s1  ;;  %p623_p5 = scmp.lt.u32.totalorder %s621_s7, %s616_s8 }
  0x3b   : > { %p619_p6 = pnand %p617_p1, %p588_p3  ;;  %p625_p7 = scmp.lt.u32.totalorder %s616_s8, %s916_s29 }
  0x3c   : > { %p624_p4 = por %p623_p5, %p622_p2 }
  0x3d   : > { %p620_p13 = pneg %p619_p6 }
  0x3e   : > { %p626_p10 = por %p625_p7, %p624_p4 }
  0x40   : > { %p627_p12 = pnand %p626_p10, %p620_p13 }
  0x42   : > { %630 = shalt.err (!%p627_p12)
}
  0x43   : > { %s631_s28 = scalar_lea.vmem %s199_s4, 128  ;;  %s769_s18 = smov [#allocation5]  }
  0x44   : > { %p632_p9 = scmp.ne.s32.totalorder %s199_s4, %s631_s28  ;;  %s636_s22 = sshll.u32 %s769_s18, 4  ;;  %s637_s22 = int_to_ptr.vmem [resolvable:$false] %s636_s22 }
  0x45   : > { %s638_s23 = scalar_lea.vmem %s637_s22, 256  ;;  %p639_p8 = scmp.lt.s32.totalorder %s199_s4, %s637_s22 }
  0x46   : > { %p634_p1 = pnand %p632_p9, %p588_p3  ;;  %p640_p11 = scmp.lt.s32.totalorder %s638_s23, %s631_s28 }
  0x48   : > { %p635_p6 = pneg %p634_p1  ;;  %p641_p2 = por %p640_p11, %p639_p8 }
  0x4a   : > { %p642_p5 = pnand %p641_p2, %p635_p6 }
  0x4c   : > { %645 = shalt.err (!%p642_p5)
}
  0x4d   : > { %517 = dma.hbm_to_vmem [thread:$0]  (!%p871_p0), %s916_s29, 128, %s199_s4, %s187_s6  }
  0x4e   : > { %p1066_p13 = scmp.ne.s32.totalorder %s1065_s21, 0 }
  0x4f   : > { %s941_s30 = sand.u32 (!%p1066_p13), 1, %s748_s13   ;;  %p1067_p3 = scmp.ne.s32.totalorder (!%p1066_p13), %s1060_s24, 0 }
  0x50   : > { %207 = sbr.rel (%p1066_p13) target bundleno = 150 (0x96), region = 28  ;;  %s490_s8 = sshll.u32 (!%p1066_p13), %s941_s30, 5 }
  0x51   : > { %s210_s10 = scalar_lea.sflag (!%p1066_p13), [#allocation3], %s941_s30  ;;  %s213_s5 = scalar_lea.vmem (!%p1066_p13), [#allocation2], %s490_s8 }
  0x57   : > { %727 = dma.done.wait (%p1067_p3), %s210_s10, 512  }
  0x58   : > { %729 = vsyncadd (%p1067_p3), %s210_s10, 4294966784  ;;  %s950_s9 = sshll.u32 %s941_s30, 3  ;;  %s219_s21 = scalar_lea.sflag [#allocation6], %s941_s30 }
  0x59   : > { %s222_s29 = scalar_lea.vmem [#allocation5], %s950_s9 }
  0x5a   : > { %731 = dma.done.wait (%p1067_p3), %s219_s21, 128  }
  0x5b   : > { %733 = vsyncadd (%p1067_p3), %s219_s21, 4294967168  ;;  %v292_v0 = vlaneseq  ;;  %v261_v5 = vld [vmem:[%s213_s5] sm:$0xff]  ;;  %v262_v6 = vld [vmem:[%s213_s5 + $0x8] sm:$0xff]  ;;  %v770_v13 = vmov 0.0   ;;  %s498_s24 = sshll.u32 %s756_s15, 7  ;;  %s254_s4 = scalar_lea.vmem [#allocation8], %s950_s9 }
  0x5c   : > { %v263_v7 = vld [vmem:[%s213_s5 + $0x10] sm:$0xff]  ;;  %v264_v8 = vld [vmem:[%s213_s5 + $0x18] sm:$0xff]  ;;  %v265_v9 = vmax.f32 %v261_v5, %v262_v6  ;;  %v286_v10 = vld [vmem:[%s222_s29] sm:$0xff]  ;;  %s344_s6 = sshll.u32 %s254_s4, 4  ;;  %s970_s19 = scalar_lea.hbm %s1056_s3, %s498_s24  ;;  %s972_s6 = int_to_ptr.vmem [resolvable:$true] %s344_s6 }
  0x5d   : > { %v293_v1 = vshrl.u32 %v292_v0, 7  ;;  %v295_v2 = vand.u32 127, %v292_v0  ;;  %v266_v11 = vmax.f32 %v263_v7, %v264_v8  ;;  %vm287_vm0 = vcmp.ge.s32.totalorder %v286_v10, 0  ;;  %s318_s28 = scalar_lea.sflag [#allocation9], %s941_s30  ;;  %s646_s18 = scalar_lea.vmem %s972_s6, 128 }
  0x5e   : > { %vm288_vm1 = vcmp.lt.s32.totalorder %v286_v10, 4  ;;  %p647_p8 = scmp.ne.s32.totalorder %s972_s6, %s646_s18  ;;  %p1068_p0 = scmp.ne.s32.totalorder %s1061_s25, 0 }
  0x5f   : > { %v299_v3 = vmul.u32 128, %v293_v1  ;;  %vm289_vm3 = vmand %vm287_vm0, %vm288_vm1  ;;  %v267_v12 = vmax.f32 %v265_v9, %v266_v11  ;;  %s771_s22 = smov [#allocation8]  }
  0x60   : > { %v495_v14 = vsel %vm289_vm3, 1.0, %v770_v13  ;;  %p648_p11 = pnand %p647_p8, %p1068_p0  ;;  %s650_s23 = sshll.u32 %s771_s22, 4  ;;  %s651_s23 = int_to_ptr.vmem [resolvable:$false] %s650_s23 }
  0x61   : > { %v958_v4 = vadd.s32 %v299_v3, %v295_v2  ;;  %v268_v16 = vsub.f32 %v261_v5, %v267_v12  ;;  %v269_v17 = vsub.f32 %v262_v6, %v267_v12  ;;  %v270_v18 = vsub.f32 %v263_v7, %v267_v12  ;;  %s652_s8 = scalar_lea.vmem %s651_s23, 256  ;;  %p653_p7 = scmp.lt.s32.totalorder %s972_s6, %s651_s23 }
  0x62   : > { %v271_v19 = vsub.f32 %v264_v8, %v267_v12  ;;  %p649_p4 = pneg %p648_p11  ;;  %p654_p10 = scmp.lt.s32.totalorder %s652_s8, %s646_s18 }
  0x63   : > { %vm301_vm2 = vcmp.lt.s32.totalorder %v958_v4, 256  ;;  %v272_v20 = vmul.f32 1.442695, %v268_v16  ;;  %v274_v21 = vmul.f32 1.442695, %v269_v17 }
  0x64   : > { %v303_v15 = vsel %vm301_vm2, %v495_v14, 0.0  ;;  %v276_v22 = vmul.f32 1.442695, %v270_v18  ;;  %v278_v23 = vmul.f32 1.442695, %v271_v19  ;;  %p655_p12 = por %p654_p10, %p653_p7 }
  0x65   : > { %311 = vst [vmem:[%s254_s4] sm:$0xff] %v303_v15  ;;  %578 = vpow2.f32 %v272_v20 }
  0x66   : > { %p656_p9 = pnand %p655_p12, %p649_p4 }
  0x68   : > { %659 = shalt.err (!%p656_p9)
}
  0x69   : > { %s660_s10 = scalar_lea.hbm %s970_s19, 128  ;;  %s664_s29 = scalar_lea.hbm %s1056_s3, 256 }
  0x6a   : > { %p661_p1 = scmp.ne.s32.totalorder %s970_s19, %s660_s10  ;;  %p665_p5 = scmp.lt.u32.totalorder %s970_s19, %s1056_s3 }
  0x6b   : > { %p666_p13 = scmp.lt.u32.totalorder %s664_s29, %s660_s10  ;;  %p668_p8 = scmp.lt.u32.totalorder %s660_s10, %s970_s19 }
  0x6c   : > { %p662_p6 = pnand %p661_p1, %p1068_p0 }
  0x6d   : > { %p667_p3 = por %p666_p13, %p665_p5 }
  0x6e   : > { %p663_p2 = pneg %p662_p6 }
  0x6f   : > { %p669_p11 = por %p668_p8, %p667_p3 }
  0x71   : > { %p670_p4 = pnand %p669_p11, %p663_p2 }
  0x73   : > { %673 = shalt.err (!%p670_p4)
}
  0x74   : > { %508 = dma.vmem_to_hbm [thread:$0]  (%p1068_p0), %s972_s6, 128, %s970_s19, %s318_s28   ;;  %580 = vpow2.f32 %v274_v21  ;;  %v579_v24 = vpop.eup %578 }
  0x75   : > { %582 = vpow2.f32 %v276_v22  ;;  %s247_s11 = scalar_lea.vmem [#allocation7], %s950_s9  ;;  %s1004_s28 = scalar_lea.hbm %s1055_s2, %s498_s24 }
  0x76   : > { %584 = vpow2.f32 %v278_v23  ;;  %s331_s18 = sshll.u32 %s247_s11, 4  ;;  %s313_s22 = scalar_lea.sflag [#allocation4], %s941_s30  ;;  %s1006_s18 = int_to_ptr.vmem [resolvable:$true] %s331_s18 }
  0x77   : > { %s674_s23 = scalar_lea.vmem %s1006_s18, 128  ;;  %s772_s9 = smov [#allocation7]  }
  0x78   : > { %p675_p7 = scmp.ne.s32.totalorder %s1006_s18, %s674_s23  ;;  %s678_s8 = sshll.u32 %s772_s9, 4  ;;  %s679_s8 = int_to_ptr.vmem [resolvable:$false] %s678_s8 }
  0x79   : > { %s680_s15 = scalar_lea.vmem %s679_s8, 256  ;;  %p681_p9 = scmp.lt.s32.totalorder %s1006_s18, %s679_s8 }
  0x7a   : > { %p676_p10 = pnand %p675_p7, %p1068_p0  ;;  %p682_p1 = scmp.lt.s32.totalorder %s680_s15, %s674_s23 }
  0x7c   : > { %p677_p12 = pneg %p676_p10  ;;  %p683_p6 = por %p682_p1, %p681_p9 }
  0x7e   : > { %v581_v25 = vpop.eup %580  ;;  %p684_p2 = pnand %p683_p6, %p677_p12 }
  0x7f   : > { %v583_v26 = vpop.eup %582  ;;  %v280_v27 = vadd.f32 %v581_v25, %v579_v24 }
  0x80   : > { %v585_v28 = vpop.eup %584 }
  0x81   : > { %v281_v29 = vadd.f32 %v583_v26, %v280_v27 }
  0x83   : > { %v282_v30 = vadd.f32 %v585_v28, %v281_v29 }
  0x85   : > { %vm283_vm4 = vcmp.lt.f32.partialorder %v282_v30, 2.0 }
  0x86   : > { %v494_v31 = vsel %vm283_vm4, 1.0, %v770_v13 }
  0x87   : > { %v302_v32 = vsel %vm301_vm2, %v494_v31, 0.0 }
  0x88   : > { %308 = vst [vmem:[%s247_s11] sm:$0xff] %v302_v32 }
  0x89   : > { %687 = shalt.err (!%p684_p2)
}
  0x8a   : > { %s688_s30 = scalar_lea.hbm %s1004_s28, 128  ;;  %s692_s5 = scalar_lea.hbm %s1055_s2, 256 }
  0x8b   : > { %p689_p5 = scmp.ne.s32.totalorder %s1004_s28, %s688_s30  ;;  %p693_p8 = scmp.lt.u32.totalorder %s1004_s28, %s1055_s2 }
  0x8c   : > { %p694_p11 = scmp.lt.u32.totalorder %s692_s5, %s688_s30  ;;  %p696_p7 = scmp.lt.u32.totalorder %s688_s30, %s1004_s28 }
  0x8d   : > { %p690_p13 = pnand %p689_p5, %p1068_p0 }
  0x8e   : > { %p695_p4 = por %p694_p11, %p693_p8 }
  0x8f   : > { %p691_p3 = pneg %p690_p13 }
  0x90   : > { %p697_p10 = por %p696_p7, %p695_p4 }
  0x92   : > { %p698_p12 = pnand %p697_p10, %p691_p3 }
  0x94   : > { %701 = shalt.err (!%p698_p12)
}
  0x95   : > { %507 = dma.vmem_to_hbm [thread:$0]  (%p1068_p0), %s1006_s18, 128, %s1004_s28, %s313_s22  }
  0x96 PF: > { %s356_s4 = sand.u32 1, %s744_s12   ;;  %p1069_p9 = scmp.ne.s32.totalorder %s1062_s27, 0 }
  0x97   : > { %p1070_p1 = scmp.ge.s32.totalorder %s764_s17, 2  ;;  %s357_s7 = scalar_lea.sflag [#allocation4], %s356_s4 }
  0x99   : > { %p519_p6 = pnand %p1070_p1, %p1069_p9 }
  0x9b   : > { %735 = dma.done.wait (!%p519_p6), %s357_s7, 128  }
  0x9c   : > { %737 = vsyncadd (!%p519_p6), %s357_s7, 4294967168  ;;  %s366_s11 = scalar_lea.sflag [#allocation9], %s356_s4 }
  0x9d   : > { %739 = dma.done.wait (!%p519_p6), %s366_s11, 128  }
  0x9e   : > { %741 = vsyncadd (!%p519_p6), %s366_s11, 4294967168  ;;  %s26_s17 = sadd.s32 1, %s764_s17   ;;  %s1071_s12 = smov %s748_s13 }
  0x9f   : > { %p23_p2 = scmp.ge.s32.totalorder %s26_s17, 4   ;;  %s1072_s13 = smov %s752_s14 }
  0xa0   : > { %s1073_s14 = smov %s849_s26  ;;  %s1074_s15 = smov %s760_s16 }
  0xa1   : > { %s1075_s16 = smov %s1077_s20  ;;  %25 = sbr.rel (!%p23_p2) target bundleno = 10 (0xa), region = 107 }
  0xa8   :  { %371 = vsyncpa [#allocation3], 1 }
  0xa9   :  { %373 = vsyncpa [#allocation3 + $0x1], 1 }
  0xaa   :  { %374 = vsyncpa [#allocation6], 1 }
  0xab   :  { %376 = vsyncpa [#allocation6 + $0x1], 1 }
  0xac   :  { %377 = vsyncpa [#allocation4], 1 }
  0xad   :  { %379 = vsyncpa [#allocation4 + $0x1], 1 }
  0xae   :  { %380 = vsyncpa [#allocation9], 1 }
  0xaf   :  { %382 = vsyncpa [#allocation9 + $0x1], 1 }

</bundles_post_ra>
